<compile_context>
chip_gen: v7x
topology: tpu7x:2x2x1
jax: 0.10.0
libtpu: 0.0.40
codegen_flags: <defaults>
</compile_context>

<pallas_src>
import functools
import math

import jax
import jax.numpy as jnp
from jax.experimental import pallas as pl
from jax.experimental.pallas import tpu as pltpu


def _round_up(x, m):
    return (x + m - 1) // m * m


def _qtran_v_kernel(hidden_ref, state_ref,
                    w1_ref, b1_ref, w2_ref, b2_ref,
                    vw1s_ref, vw1h_ref, vb1_ref,
                    vw2_ref, vb2_ref, vw3_ref, vb3_ref,
                    out_ref, *, n_agents):
    f32 = jnp.float32
    bf16 = jnp.bfloat16

    # ---- encoder layer 1 + agent sum:  sum_a relu(h_a @ W1 + b1) ----
    w1 = w1_ref[...]
    b1 = b1_ref[...]
    he_sum = None
    for a in range(n_agents):                                   # A is small & static
        t = jnp.dot(hidden_ref[a], w1, preferred_element_type=f32)   # (TILE_B, HP)
        t = jnp.maximum(t + b1, 0.0)
        he_sum = t if he_sum is None else he_sum + t

    # ---- encoder layer 2, hoisted after the (linear) agent sum ----
    # sum_a (relu(.) @ W2 + b2) == (sum_a relu(.)) @ W2 + A * b2
    enc = (jnp.dot(he_sum.astype(bf16), w2_ref[...], preferred_element_type=f32)
           + b2_ref[...] * float(n_agents))                          # (TILE_B, HP)

    # ---- V head: concat([state, enc]) @ Wv1 == state @ Wv1[:S] + enc @ Wv1[S:] ----
    x = (jnp.dot(state_ref[...], vw1s_ref[...], preferred_element_type=f32)
         + jnp.dot(enc.astype(bf16), vw1h_ref[...], preferred_element_type=f32)
         + vb1_ref[...])
    x = jnp.maximum(x, 0.0)
    x = jnp.dot(x.astype(bf16), vw2_ref[...], preferred_element_type=f32) + vb2_ref[...]
    x = jnp.maximum(x, 0.0)                                           # (TILE_B, QP)

    # ---- final Linear(Q, 1): lane-dense (1, TILE_B) row instead of an N=1 matmul ----
    v_row = jax.lax.dot_general(
        vw3_ref[...], x.astype(bf16),
        dimension_numbers=(((1,), (1,)), ((), ())),
        preferred_element_type=f32)                                   # (1, TILE_B)
    out_ref[...] = (v_row + vb3_ref[0]).astype(out_ref.dtype)


def prepare_params(params, state_shape):
    """One-time prep (outside the hot path): transpose PyTorch (out,in) weights to
    (in,out), zero-pad feature dims to 128-lane width, cast matmul weights to bf16."""
    S = state_shape
    H = params["enc_w1"].shape[0]
    Q = params["v_w2"].shape[0]
    HP, SP, QP = _round_up(H, 128), _round_up(S, 128), _round_up(Q, 128)

    def pad_w(w_in_out, rows, cols):
        return jnp.pad(w_in_out,
                       ((0, rows - w_in_out.shape[0]),
                        (0, cols - w_in_out.shape[1]))).astype(jnp.bfloat16)

    def pad_b(b, n):
        return jnp.pad(b, (0, n - b.shape[0])).reshape(1, n).astype(jnp.float32)

    vw1 = params["v_w1"].T                                   # (S+H, Q)
    return dict(
        w1=pad_w(params["enc_w1"].T, HP, HP), b1=pad_b(params["enc_b1"], HP),
        w2=pad_w(params["enc_w2"].T, HP, HP), b2=pad_b(params["enc_b2"], HP),
        vw1s=pad_w(vw1[:S], SP, QP), vw1h=pad_w(vw1[S:], HP, QP),
        vb1=pad_b(params["v_b1"], QP),
        vw2=pad_w(params["v_w2"].T, QP, QP), vb2=pad_b(params["v_b2"], QP),
        vw3=pad_w(params["v_w3"], 1, QP),                    # (1, Q) row, lane-major
        vb3=params["v_b3"].astype(jnp.float32).reshape(1),   # scalar bias -> SMEM
    )


def qtran_v_forward(state, hidden, prep, *, tile_b=512):
    """state: (E, T, S); hidden: (E, T, A, H); prep from prepare_params. -> (E*T, 1)."""
    E, T, A, H = hidden.shape
    B = E * T
    S = state.shape[-1]
    HP = prep["w1"].shape[0]
    SP = prep["vw1s"].shape[0]
    QP = prep["vw2"].shape[0]

    TILE_B = min(tile_b, _round_up(B, 128))        # multiple of 128 -> lane-dense out
    B_pad = _round_up(B, TILE_B)
    num_tiles = B_pad // TILE_B

    # (E,T,A,H) -> (A, B_pad, HP): one XLA relayout in the wrapper; inside the kernel the
    # agent sum is then a plain add of contiguous slabs (no strided reduction).
    hidden_abh = jnp.transpose(hidden.reshape(B, A, H), (1, 0, 2))
    hidden_abh = jnp.pad(hidden_abh,
                         ((0, 0), (0, B_pad - B), (0, HP - H))).astype(jnp.bfloat16)
    state2d = jnp.pad(state.reshape(B, S),
                      ((0, B_pad - B), (0, SP - S))).astype(jnp.bfloat16)

    args = (hidden_abh, state2d,
            prep["w1"], prep["b1"], prep["w2"], prep["b2"],
            prep["vw1s"], prep["vw1h"], prep["vb1"],
            prep["vw2"], prep["vb2"], prep["vw3"], prep["vb3"])

    def const(shape):  # weight/bias resident in VMEM across all grid steps
        return pl.BlockSpec(shape, lambda i: (0, 0))

    in_specs = [
        pl.BlockSpec((A, TILE_B, HP), lambda i: (0, i, 0)),   # hidden stream
        pl.BlockSpec((TILE_B, SP), lambda i: (i, 0)),         # state stream
        const((HP, HP)), const((1, HP)),                      # enc W1, b1
        const((HP, HP)), const((1, HP)),                      # enc W2, b2
        const((SP, QP)), const((HP, QP)), const((1, QP)),     # V W1 (split), b1
        const((QP, QP)), const((1, QP)),                      # V W2, b2
        const((1, QP)),                                       # V W3 row
        pl.BlockSpec(memory_space=pltpu.MemorySpace.SMEM),    # V b3 scalar
    ]

    flops = 2 * B_pad * (A * HP * HP + HP * HP + SP * QP + HP * QP + QP * QP + QP)
    bytes_accessed = int(sum(int(a.size) * a.dtype.itemsize for a in args)) + B_pad * 4

    out = pl.pallas_call(
        functools.partial(_qtran_v_kernel, n_agents=A),
        out_shape=jax.ShapeDtypeStruct((1, B_pad), jnp.float32),
        grid_spec=pltpu.PrefetchScalarGridSpec(
            num_scalar_prefetch=0,
            grid=(num_tiles,),
            in_specs=in_specs,
            out_specs=pl.BlockSpec((1, TILE_B), lambda i: (0, i)),
        ),
        compiler_params=pltpu.CompilerParams(
            dimension_semantics=("parallel",),
            vmem_limit_bytes=32 * 1024 * 1024),
        cost_estimate=pl.CostEstimate(flops=flops, transcendentals=0,
                                      bytes_accessed=bytes_accessed),
    )(*args)

    return out[0, :B].reshape(B, 1)


# ------------------------- reference / test harness -------------------------

def _init_linear(key, out_dim, in_dim):
    # Deterministic PyTorch-style uniform(-1/sqrt(fan_in), 1/sqrt(fan_in)).
    kw, kb = jax.random.split(key)
    bound = 1.0 / math.sqrt(in_dim)
    w = jax.random.uniform(kw, (out_dim, in_dim), jnp.float32, -bound, bound)
    bias = jax.random.uniform(kb, (out_dim,), jnp.float32, -bound, bound)
    return w, bias


def make_params(key, rnn_hidden_dim, state_shape, qtran_hidden_dim):
    keys = jax.random.split(key, 5)
    H, S, Q = rnn_hidden_dim, state_shape, qtran_hidden_dim
    enc_w1, enc_b1 = _init_linear(keys[0], H, H)
    enc_w2, enc_b2 = _init_linear(keys[1], H, H)
    v_w1, v_b1 = _init_linear(keys[2], Q, S + H)
    v_w2, v_b2 = _init_linear(keys[3], Q, Q)
    v_w3, v_b3 = _init_linear(keys[4], 1, Q)
    return dict(enc_w1=enc_w1, enc_b1=enc_b1, enc_w2=enc_w2, enc_b2=enc_b2,
                v_w1=v_w1, v_b1=v_b1, v_w2=v_w2, v_b2=v_b2, v_w3=v_w3, v_b3=v_b3)


def qtran_v_reference(state, hidden, params):
    E, T, A, H = hidden.shape
    B = E * T
    st = state.reshape(B, -1)
    h = hidden.reshape(-1, H)
    he = jnp.maximum(h @ params["enc_w1"].T + params["enc_b1"], 0.0)
    he = he @ params["enc_w2"].T + params["enc_b2"]
    he = he.reshape(B, A, H).sum(axis=1)
    x = jnp.concatenate([st, he], axis=-1)
    x = jnp.maximum(x @ params["v_w1"].T + params["v_b1"], 0.0)
    x = jnp.maximum(x @ params["v_w2"].T + params["v_b2"], 0.0)
    return x @ params["v_w3"].T + params["v_b3"]


if __name__ == "__main__":
    # Small config implied by the module's forward.
    episode_num, max_episode_len, n_agents = 2, 8, 4
    rnn_hidden_dim, state_shape, qtran_hidden_dim = 32, 48, 64

    key = jax.random.PRNGKey(0)
    k_state, k_hidden, k_params = jax.random.split(key, 3)

    state = jax.random.normal(
        k_state, (episode_num, max_episode_len, state_shape), jnp.float32)
    hidden = jax.random.normal(
        k_hidden, (episode_num, max_episode_len, n_agents, rnn_hidden_dim),
        jnp.float32)
    params = make_params(k_params, rnn_hidden_dim, state_shape, qtran_hidden_dim)

    prep = prepare_params(params, state_shape)            # one-time weight prep
    fwd = jax.jit(functools.partial(qtran_v_forward, tile_b=512))

    v = fwd(state, hidden, prep)
    jax.block_until_ready(v)

    v_ref = qtran_v_reference(state, hidden, params)
    assert v.shape == (episode_num * max_episode_len, 1)
    # bf16 MXU inputs (f32 accumulation) -> loosened tolerance vs. the pure-f32 reference.
    assert jnp.allclose(v, v_ref, atol=3e-2, rtol=3e-2), \
        f"max abs err {jnp.max(jnp.abs(v - v_ref))}"

    print("KERNEL_OK")
</pallas_src>

<mosaic_0001>
module attributes {stable_mosaic.version = 11 : i64} {
  func.func @_qtran_v_kernel(%arg0: i32, %arg1: memref<4x128x128xbf16, #tpu.memory_space<vmem>>, %arg2: memref<128x128xbf16, #tpu.memory_space<vmem>>, %arg3: memref<128x128xbf16, #tpu.memory_space<vmem>>, %arg4: memref<1x128xf32, #tpu.memory_space<vmem>>, %arg5: memref<128x128xbf16, #tpu.memory_space<vmem>>, %arg6: memref<1x128xf32, #tpu.memory_space<vmem>>, %arg7: memref<128x128xbf16, #tpu.memory_space<vmem>>, %arg8: memref<128x128xbf16, #tpu.memory_space<vmem>>, %arg9: memref<1x128xf32, #tpu.memory_space<vmem>>, %arg10: memref<128x128xbf16, #tpu.memory_space<vmem>>, %arg11: memref<1x128xf32, #tpu.memory_space<vmem>>, %arg12: memref<1x128xbf16, #tpu.memory_space<vmem>>, %arg13: memref<1xf32, #tpu.memory_space<smem>>, %arg14: memref<1x128xf32, #tpu.memory_space<vmem>>) attributes {dimension_semantics = [#tpu.dimension_semantics<parallel>], iteration_bounds = array<i64: 1>, scalar_prefetch = 0 : i64, scratch_operands = 0 : i64, tpu.core_type = #tpu.core_type<tc>, window_params = [{transform_indices = @transform_0, window_bounds = array<i64: 4, 128, 128>}, {transform_indices = @transform_1, window_bounds = array<i64: 128, 128>}, {pipeline_mode = #tpu.pipeline_mode<synchronous>, transform_indices = @transform_2, window_bounds = array<i64: 128, 128>}, {pipeline_mode = #tpu.pipeline_mode<synchronous>, transform_indices = @transform_3, window_bounds = array<i64: 1, 128>}, {pipeline_mode = #tpu.pipeline_mode<synchronous>, transform_indices = @transform_4, window_bounds = array<i64: 128, 128>}, {pipeline_mode = #tpu.pipeline_mode<synchronous>, transform_indices = @transform_5, window_bounds = array<i64: 1, 128>}, {pipeline_mode = #tpu.pipeline_mode<synchronous>, transform_indices = @transform_6, window_bounds = array<i64: 128, 128>}, {pipeline_mode = #tpu.pipeline_mode<synchronous>, transform_indices = @transform_7, window_bounds = array<i64: 128, 128>}, {pipeline_mode = #tpu.pipeline_mode<synchronous>, transform_indices = @transform_8, window_bounds = array<i64: 1, 128>}, {pipeline_mode = #tpu.pipeline_mode<synchronous>, transform_indices = @transform_9, window_bounds = array<i64: 128, 128>}, {pipeline_mode = #tpu.pipeline_mode<synchronous>, transform_indices = @transform_10, window_bounds = array<i64: 1, 128>}, {pipeline_mode = #tpu.pipeline_mode<synchronous>, transform_indices = @transform_11, window_bounds = array<i64: 1, 128>}, {transform_indices = @transform_12, window_bounds = array<i64: 1>}, {transform_indices = @transform_13, window_bounds = array<i64: 1, 128>}]} {
    %c0 = arith.constant 0 : index
    %c0_0 = arith.constant 0 : index
    %0 = vector.load %arg3[%c0, %c0_0] : memref<128x128xbf16, #tpu.memory_space<vmem>>, vector<128x128xbf16>
    %c0_1 = arith.constant 0 : index
    %c0_2 = arith.constant 0 : index
    %1 = vector.load %arg4[%c0_1, %c0_2] : memref<1x128xf32, #tpu.memory_space<vmem>>, vector<1x128xf32>
    %c0_3 = arith.constant 0 : index
    %c0_4 = arith.constant 0 : index
    %c0_5 = arith.constant 0 : index
    %2 = vector.load %arg1[%c0_3, %c0_4, %c0_5] : memref<4x128x128xbf16, #tpu.memory_space<vmem>>, vector<1x128x128xbf16>
    %3 = vector.shape_cast %2 : vector<1x128x128xbf16> to vector<128x128xbf16>
    %cst = arith.constant dense<0.000000e+00> : vector<128x128xf32>
    %4 = tpu.matmul %3, %0, %cst {dimension_numbers = #tpu.dot_dimension_numbers<[1], [0], [0], [1], [0, 0, 1, 1], [], []>} : vector<128x128xbf16>, vector<128x128xbf16>, vector<128x128xf32> -> vector<128x128xf32>
    %5 = vector.broadcast %1 : vector<1x128xf32> to vector<128x128xf32>
    %6 = arith.addf %4, %5 : vector<128x128xf32>
    %cst_6 = arith.constant 0.000000e+00 : f32
    %7 = vector.broadcast %cst_6 : f32 to vector<128x128xf32>
    %8 = arith.maximumf %6, %7 : vector<128x128xf32>
    %c1 = arith.constant 1 : index
    %c0_7 = arith.constant 0 : index
    %c0_8 = arith.constant 0 : index
    %9 = vector.load %arg1[%c1, %c0_7, %c0_8] : memref<4x128x128xbf16, #tpu.memory_space<vmem>>, vector<1x128x128xbf16>
    %10 = vector.shape_cast %9 : vector<1x128x128xbf16> to vector<128x128xbf16>
    %cst_9 = arith.constant dense<0.000000e+00> : vector<128x128xf32>
    %11 = tpu.matmul %10, %0, %cst_9 {dimension_numbers = #tpu.dot_dimension_numbers<[1], [0], [0], [1], [0, 0, 1, 1], [], []>} : vector<128x128xbf16>, vector<128x128xbf16>, vector<128x128xf32> -> vector<128x128xf32>
    %12 = vector.broadcast %1 : vector<1x128xf32> to vector<128x128xf32>
    %13 = arith.addf %11, %12 : vector<128x128xf32>
    %cst_10 = arith.constant 0.000000e+00 : f32
    %14 = vector.broadcast %cst_10 : f32 to vector<128x128xf32>
    %15 = arith.maximumf %13, %14 : vector<128x128xf32>
    %16 = arith.addf %8, %15 : vector<128x128xf32>
    %c2 = arith.constant 2 : index
    %c0_11 = arith.constant 0 : index
    %c0_12 = arith.constant 0 : index
    %17 = vector.load %arg1[%c2, %c0_11, %c0_12] : memref<4x128x128xbf16, #tpu.memory_space<vmem>>, vector<1x128x128xbf16>
    %18 = vector.shape_cast %17 : vector<1x128x128xbf16> to vector<128x128xbf16>
    %cst_13 = arith.constant dense<0.000000e+00> : vector<128x128xf32>
    %19 = tpu.matmul %18, %0, %cst_13 {dimension_numbers = #tpu.dot_dimension_numbers<[1], [0], [0], [1], [0, 0, 1, 1], [], []>} : vector<128x128xbf16>, vector<128x128xbf16>, vector<128x128xf32> -> vector<128x128xf32>
    %20 = vector.broadcast %1 : vector<1x128xf32> to vector<128x128xf32>
    %21 = arith.addf %19, %20 : vector<128x128xf32>
    %cst_14 = arith.constant 0.000000e+00 : f32
    %22 = vector.broadcast %cst_14 : f32 to vector<128x128xf32>
    %23 = arith.maximumf %21, %22 : vector<128x128xf32>
    %24 = arith.addf %16, %23 : vector<128x128xf32>
    %c3 = arith.constant 3 : index
    %c0_15 = arith.constant 0 : index
    %c0_16 = arith.constant 0 : index
    %25 = vector.load %arg1[%c3, %c0_15, %c0_16] : memref<4x128x128xbf16, #tpu.memory_space<vmem>>, vector<1x128x128xbf16>
    %26 = vector.shape_cast %25 : vector<1x128x128xbf16> to vector<128x128xbf16>
    %cst_17 = arith.constant dense<0.000000e+00> : vector<128x128xf32>
    %27 = tpu.matmul %26, %0, %cst_17 {dimension_numbers = #tpu.dot_dimension_numbers<[1], [0], [0], [1], [0, 0, 1, 1], [], []>} : vector<128x128xbf16>, vector<128x128xbf16>, vector<128x128xf32> -> vector<128x128xf32>
    %28 = vector.broadcast %1 : vector<1x128xf32> to vector<128x128xf32>
    %29 = arith.addf %27, %28 : vector<128x128xf32>
    %cst_18 = arith.constant 0.000000e+00 : f32
    %30 = vector.broadcast %cst_18 : f32 to vector<128x128xf32>
    %31 = arith.maximumf %29, %30 : vector<128x128xf32>
    %32 = arith.addf %24, %31 : vector<128x128xf32>
    %33 = arith.truncf %32 : vector<128x128xf32> to vector<128x128xbf16>
    %c0_19 = arith.constant 0 : index
    %c0_20 = arith.constant 0 : index
    %34 = vector.load %arg5[%c0_19, %c0_20] : memref<128x128xbf16, #tpu.memory_space<vmem>>, vector<128x128xbf16>
    %cst_21 = arith.constant dense<0.000000e+00> : vector<128x128xf32>
    %35 = tpu.matmul %33, %34, %cst_21 {dimension_numbers = #tpu.dot_dimension_numbers<[1], [0], [0], [1], [0, 0, 1, 1], [], []>} : vector<128x128xbf16>, vector<128x128xbf16>, vector<128x128xf32> -> vector<128x128xf32>
    %c0_22 = arith.constant 0 : index
    %c0_23 = arith.constant 0 : index
    %36 = vector.load %arg6[%c0_22, %c0_23] : memref<1x128xf32, #tpu.memory_space<vmem>>, vector<1x128xf32>
    %cst_24 = arith.constant 4.000000e+00 : f32
    %37 = vector.broadcast %cst_24 : f32 to vector<1x128xf32>
    %38 = arith.mulf %36, %37 : vector<1x128xf32>
    %39 = vector.broadcast %38 : vector<1x128xf32> to vector<128x128xf32>
    %40 = arith.addf %35, %39 : vector<128x128xf32>
    %c0_25 = arith.constant 0 : index
    %c0_26 = arith.constant 0 : index
    %41 = vector.load %arg2[%c0_25, %c0_26] : memref<128x128xbf16, #tpu.memory_space<vmem>>, vector<128x128xbf16>
    %c0_27 = arith.constant 0 : index
    %c0_28 = arith.constant 0 : index
    %42 = vector.load %arg7[%c0_27, %c0_28] : memref<128x128xbf16, #tpu.memory_space<vmem>>, vector<128x128xbf16>
    %cst_29 = arith.constant dense<0.000000e+00> : vector<128x128xf32>
    %43 = tpu.matmul %41, %42, %cst_29 {dimension_numbers = #tpu.dot_dimension_numbers<[1], [0], [0], [1], [0, 0, 1, 1], [], []>} : vector<128x128xbf16>, vector<128x128xbf16>, vector<128x128xf32> -> vector<128x128xf32>
    %44 = arith.truncf %40 : vector<128x128xf32> to vector<128x128xbf16>
    %c0_30 = arith.constant 0 : index
    %c0_31 = arith.constant 0 : index
    %45 = vector.load %arg8[%c0_30, %c0_31] : memref<128x128xbf16, #tpu.memory_space<vmem>>, vector<128x128xbf16>
    %cst_32 = arith.constant dense<0.000000e+00> : vector<128x128xf32>
    %46 = tpu.matmul %44, %45, %cst_32 {dimension_numbers = #tpu.dot_dimension_numbers<[1], [0], [0], [1], [0, 0, 1, 1], [], []>} : vector<128x128xbf16>, vector<128x128xbf16>, vector<128x128xf32> -> vector<128x128xf32>
    %47 = arith.addf %43, %46 : vector<128x128xf32>
    %c0_33 = arith.constant 0 : index
    %c0_34 = arith.constant 0 : index
    %48 = vector.load %arg9[%c0_33, %c0_34] : memref<1x128xf32, #tpu.memory_space<vmem>>, vector<1x128xf32>
    %49 = vector.broadcast %48 : vector<1x128xf32> to vector<128x128xf32>
    %50 = arith.addf %47, %49 : vector<128x128xf32>
    %cst_35 = arith.constant 0.000000e+00 : f32
    %51 = vector.broadcast %cst_35 : f32 to vector<128x128xf32>
    %52 = arith.maximumf %50, %51 : vector<128x128xf32>
    %53 = arith.truncf %52 : vector<128x128xf32> to vector<128x128xbf16>
    %c0_36 = arith.constant 0 : index
    %c0_37 = arith.constant 0 : index
    %54 = vector.load %arg10[%c0_36, %c0_37] : memref<128x128xbf16, #tpu.memory_space<vmem>>, vector<128x128xbf16>
    %cst_38 = arith.constant dense<0.000000e+00> : vector<128x128xf32>
    %55 = tpu.matmul %53, %54, %cst_38 {dimension_numbers = #tpu.dot_dimension_numbers<[1], [0], [0], [1], [0, 0, 1, 1], [], []>} : vector<128x128xbf16>, vector<128x128xbf16>, vector<128x128xf32> -> vector<128x128xf32>
    %c0_39 = arith.constant 0 : index
    %c0_40 = arith.constant 0 : index
    %56 = vector.load %arg11[%c0_39, %c0_40] : memref<1x128xf32, #tpu.memory_space<vmem>>, vector<1x128xf32>
    %57 = vector.broadcast %56 : vector<1x128xf32> to vector<128x128xf32>
    %58 = arith.addf %55, %57 : vector<128x128xf32>
    %cst_41 = arith.constant 0.000000e+00 : f32
    %59 = vector.broadcast %cst_41 : f32 to vector<128x128xf32>
    %60 = arith.maximumf %58, %59 : vector<128x128xf32>
    %c0_42 = arith.constant 0 : index
    %c0_43 = arith.constant 0 : index
    %61 = vector.load %arg12[%c0_42, %c0_43] : memref<1x128xbf16, #tpu.memory_space<vmem>>, vector<1x128xbf16>
    %62 = arith.truncf %60 : vector<128x128xf32> to vector<128x128xbf16>
    %cst_44 = arith.constant dense<0.000000e+00> : vector<1x128xf32>
    %63 = tpu.matmul %61, %62, %cst_44 {dimension_numbers = #tpu.dot_dimension_numbers<[1], [1], [0], [0], [0, 0, 1, 0], [], []>} : vector<1x128xbf16>, vector<128x128xbf16>, vector<1x128xf32> -> vector<1x128xf32>
    %c0_45 = arith.constant 0 : index
    %64 = memref.load %arg13[%c0_45] : memref<1xf32, #tpu.memory_space<smem>>
    %65 = vector.broadcast %64 : f32 to vector<1x128xf32>
    %66 = arith.addf %63, %65 : vector<1x128xf32>
    %c0_46 = arith.constant 0 : index
    %c0_47 = arith.constant 0 : index
    %67 = vector.load %arg14[%c0_46, %c0_47] : memref<1x128xf32, #tpu.memory_space<vmem>>, vector<1x128xf32>
    tpu.vector_store %arg14[%c0_46, %c0_47], %66 {strides = array<i32>} : memref<1x128xf32, #tpu.memory_space<vmem>>, vector<1x128xf32>,
    return
  }
  func.func @transform_0(%arg0: i32) -> (i32, i32, i32) {
    %c0_i32 = arith.constant 0 : i32
    %c0_i32_0 = arith.constant 0 : i32
    %c0_i32_1 = arith.constant 0 : i32
    return %c0_i32, %arg0, %c0_i32_0 : i32, i32, i32
  }
  func.func @transform_1(%arg0: i32) -> (i32, i32) {
    %c0_i32 = arith.constant 0 : i32
    %c0_i32_0 = arith.constant 0 : i32
    return %arg0, %c0_i32 : i32, i32
  }
  func.func @transform_2(%arg0: i32) -> (i32, i32) {
    %c0_i32 = arith.constant 0 : i32
    %c0_i32_0 = arith.constant 0 : i32
    %c0_i32_1 = arith.constant 0 : i32
    return %c0_i32, %c0_i32_0 : i32, i32
  }
  func.func @transform_3(%arg0: i32) -> (i32, i32) {
    %c0_i32 = arith.constant 0 : i32
    %c0_i32_0 = arith.constant 0 : i32
    %c0_i32_1 = arith.constant 0 : i32
    return %c0_i32, %c0_i32_0 : i32, i32
  }
  func.func @transform_4(%arg0: i32) -> (i32, i32) {
    %c0_i32 = arith.constant 0 : i32
    %c0_i32_0 = arith.constant 0 : i32
    %c0_i32_1 = arith.constant 0 : i32
    return %c0_i32, %c0_i32_0 : i32, i32
  }
  func.func @transform_5(%arg0: i32) -> (i32, i32) {
    %c0_i32 = arith.constant 0 : i32
    %c0_i32_0 = arith.constant 0 : i32
    %c0_i32_1 = arith.constant 0 : i32
    return %c0_i32, %c0_i32_0 : i32, i32
  }
  func.func @transform_6(%arg0: i32) -> (i32, i32) {
    %c0_i32 = arith.constant 0 : i32
    %c0_i32_0 = arith.constant 0 : i32
    %c0_i32_1 = arith.constant 0 : i32
    return %c0_i32, %c0_i32_0 : i32, i32
  }
  func.func @transform_7(%arg0: i32) -> (i32, i32) {
    %c0_i32 = arith.constant 0 : i32
    %c0_i32_0 = arith.constant 0 : i32
    %c0_i32_1 = arith.constant 0 : i32
    return %c0_i32, %c0_i32_0 : i32, i32
  }
  func.func @transform_8(%arg0: i32) -> (i32, i32) {
    %c0_i32 = arith.constant 0 : i32
    %c0_i32_0 = arith.constant 0 : i32
    %c0_i32_1 = arith.constant 0 : i32
    return %c0_i32, %c0_i32_0 : i32, i32
  }
  func.func @transform_9(%arg0: i32) -> (i32, i32) {
    %c0_i32 = arith.constant 0 : i32
    %c0_i32_0 = arith.constant 0 : i32
    %c0_i32_1 = arith.constant 0 : i32
    return %c0_i32, %c0_i32_0 : i32, i32
  }
  func.func @transform_10(%arg0: i32) -> (i32, i32) {
    %c0_i32 = arith.constant 0 : i32
    %c0_i32_0 = arith.constant 0 : i32
    %c0_i32_1 = arith.constant 0 : i32
    return %c0_i32, %c0_i32_0 : i32, i32
  }
  func.func @transform_11(%arg0: i32) -> (i32, i32) {
    %c0_i32 = arith.constant 0 : i32
    %c0_i32_0 = arith.constant 0 : i32
    %c0_i32_1 = arith.constant 0 : i32
    return %c0_i32, %c0_i32_0 : i32, i32
  }
  func.func @transform_12(%arg0: i32) -> i32 {
    %c0_i32 = arith.constant 0 : i32
    %c0_i32_0 = arith.constant 0 : i32
    return %c0_i32 : i32
  }
  func.func @transform_13(%arg0: i32) -> (i32, i32) {
    %c0_i32 = arith.constant 0 : i32
    %c0_i32_0 = arith.constant 0 : i32
    return %c0_i32, %arg0 : i32, i32
  }
}

</mosaic_0001>

<bundles_post_ra>
// kernel: qtran_v_forward.1
= control target key start
LH: loop header
LB: loop body
LE: loop exit
PB: predicated region body
PF: predicated region fallthrough
CT: control target
= control target key end

     0   :  { %vm2377_vm0 = vmmov 0   ;;  %s2969_s2 = inlined_call_operand.vmem [shape: bf16[128,128], index: 2, kind: input, shape index: {}]   ;;  %s2970_s0 = inlined_call_operand.vmem [shape: bf16[4,128,128], index: 0, kind: input, shape index: {}]   ;;  %s2971_s4 = inlined_call_operand.vmem [shape: bf16[128,128], index: 4, kind: input, shape index: {}]   ;;  %s2972_s7 = inlined_call_operand.vmem [shape: bf16[128,128], index: 7, kind: input, shape index: {}]   ;;  %s2973_s3 = inlined_call_operand.vmem [shape: f32[1,128], index: 3, kind: input, shape index: {}]   ;;  %s2974_s6 = inlined_call_operand.vmem [shape: bf16[128,128], index: 6, kind: input, shape index: {}]   ;;  %s2975_s1 = inlined_call_operand.vmem [shape: bf16[128,128], index: 1, kind: input, shape index: {}]   ;;  %s2976_s9 = inlined_call_operand.vmem [shape: bf16[128,128], index: 9, kind: input, shape index: {}]   ;;  %s2977_s5 = inlined_call_operand.vmem [shape: f32[1,128], index: 5, kind: input, shape index: {}]   ;;  %s2978_s8 = inlined_call_operand.vmem [shape: f32[1,128], index: 8, kind: input, shape index: {}]   ;;  %s2979_s10 = inlined_call_operand.vmem [shape: f32[1,128], index: 10, kind: input, shape index: {}]   ;;  %s2980_s11 = inlined_call_operand.vmem [shape: bf16[1,128], index: 11, kind: input, shape index: {}]   ;;  %s2981_s12 = inlined_call_operand.<no memory space> [shape: f32[1], index: 12, kind: input, shape index: {}]   ;;  %s2982_s13 = inlined_call_operand.vmem [shape: f32[1,128], index: 13, kind: output, shape index: {}]  }
   0x1   :  { %v2451_v0 = vld [vmem:[%s2969_s2] sm:$0xff]   ;;  %v2456_v1 = vld [vmem:[%s2969_s2 + $0x8] sm:$0xff]   ;;  %v2466_v2 = vld [vmem:[%s2969_s2 + $0x10] sm:$0xff]  }
   0x2   :  { %2002 = vmatprep.subr.bf16.mxu1 %v2451_v0  ;;  %2066 = vmatprep.subr.bf16.mxu0 %v2451_v0  ;;  %v2473_v3 = vld [vmem:[%s2969_s2 + $0x18] sm:$0xff]   ;;  %v2304_v4 = vld [vmem:[%s2970_s0] sm:$0xff]   ;;  %v2496_v6 = vld [vmem:[%s2969_s2 + $0x28] sm:$0xff]  }
   0x3   :  { %2003 = vmatpush3.bf16.msra.mxu1 %v2451_v0  ;;  %2067 = vmatpush3.bf16.msra.mxu0 %v2451_v0  ;;  %v2487_v5 = vld [vmem:[%s2969_s2 + $0x20] sm:$0xff]   ;;  %v2508_v8 = vld [vmem:[%s2969_s2 + $0x30] sm:$0xff]   ;;  %v2517_v9 = vld [vmem:[%s2969_s2 + $0x38] sm:$0xff]  }
   0x4   :  { %2004 = vmatprep.subr.bf16.mxu1 %v2456_v1  ;;  %2068 = vmatprep.subr.bf16.mxu0 %v2456_v1  ;;  %v2314_v7 = vld [vmem:[%s2970_s0 + $0x80] sm:$0xff]   ;;  %v2305_v10 = vld [vmem:[%s2970_s0 + $0x8] sm:$0xff]   ;;  %v2306_v12 = vld [vmem:[%s2970_s0 + $0x10] sm:$0xff]  }
   0x5   :  { %2018 = vmatprep.mubr.bf16.mxu1 %v2304_v4  ;;  %2082 = vmatprep.mubr.bf16.mxu0 %v2314_v7  ;;  %v2315_v11 = vld [vmem:[%s2970_s0 + $0x88] sm:$0xff]   ;;  %v2318_v13 = vld [vmem:[%s2970_s0 + $0x90] sm:$0xff]   ;;  %v2307_v14 = vld [vmem:[%s2970_s0 + $0x18] sm:$0xff]  }
   0x6   :  { %v2319_v15 = vld [vmem:[%s2970_s0 + $0x98] sm:$0xff]   ;;  %v2308_v16 = vld [vmem:[%s2970_s0 + $0x20] sm:$0xff]   ;;  %v2309_v18 = vld [vmem:[%s2970_s0 + $0x28] sm:$0xff]  }
   0x7   :  { %2005 = vmatpush3.bf16.msra.mxu1 %v2456_v1  ;;  %2069 = vmatpush3.bf16.msra.mxu0 %v2456_v1  ;;  %v2322_v17 = vld [vmem:[%s2970_s0 + $0xa0] sm:$0xff]   ;;  %v2323_v19 = vld [vmem:[%s2970_s0 + $0xa8] sm:$0xff]   ;;  %v2310_v20 = vld [vmem:[%s2970_s0 + $0x30] sm:$0xff]  }
   0x8   :  { %2006 = vmatprep.subr.bf16.mxu1 %v2466_v2  ;;  %2070 = vmatprep.subr.bf16.mxu0 %v2466_v2  ;;  %v2326_v21 = vld [vmem:[%s2970_s0 + $0xb0] sm:$0xff]   ;;  %v2311_v22 = vld [vmem:[%s2970_s0 + $0x38] sm:$0xff]   ;;  %v2312_v24 = vld [vmem:[%s2970_s0 + $0x40] sm:$0xff]  }
   0x9   :  { %v2327_v23 = vld [vmem:[%s2970_s0 + $0xb8] sm:$0xff]   ;;  %v2313_v25 = vld [vmem:[%s2970_s0 + $0x48] sm:$0xff]   ;;  %v2316_v26 = vld [vmem:[%s2970_s0 + $0x50] sm:$0xff]  }
   0xa   :  { %v2317_v27 = vld [vmem:[%s2970_s0 + $0x58] sm:$0xff]   ;;  %v2320_v28 = vld [vmem:[%s2970_s0 + $0x60] sm:$0xff]   ;;  %v2321_v29 = vld [vmem:[%s2970_s0 + $0x68] sm:$0xff]  }
   0xb   :  { %2007 = vmatpush3.bf16.msra.mxu1 %v2466_v2  ;;  %2071 = vmatpush3.bf16.msra.mxu0 %v2466_v2  ;;  %v2324_v30 = vld [vmem:[%s2970_s0 + $0x70] sm:$0xff]   ;;  %v2325_v31 = vld [vmem:[%s2970_s0 + $0x78] sm:$0xff]   ;;  %v2328_v32 = vld [vmem:[%s2970_s0 + $0xc0] sm:$0xff]  }
   0xc   :  { %2008 = vmatprep.subr.bf16.mxu1 %v2473_v3  ;;  %2072 = vmatprep.subr.bf16.mxu0 %v2473_v3  ;;  %v2329_v33 = vld [vmem:[%s2970_s0 + $0xc8] sm:$0xff]   ;;  %v2330_v34 = vld [vmem:[%s2970_s0 + $0xd0] sm:$0xff]   ;;  %v2331_v35 = vld [vmem:[%s2970_s0 + $0xd8] sm:$0xff]  }
   0xd   :  { %v2332_v36 = vld [vmem:[%s2970_s0 + $0xe0] sm:$0xff]   ;;  %v2333_v37 = vld [vmem:[%s2970_s0 + $0xe8] sm:$0xff]   ;;  %v2334_v38 = vld [vmem:[%s2970_s0 + $0xf0] sm:$0xff]  }
   0xe   :  { %v2335_v39 = vld [vmem:[%s2970_s0 + $0xf8] sm:$0xff]   ;;  %v2336_v40 = vld [vmem:[%s2971_s4] sm:$0xff]   ;;  %v2337_v41 = vld [vmem:[%s2971_s4 + $0x8] sm:$0xff]  }
   0xf   :  { %2009 = vmatpush3.bf16.msra.mxu1 %v2473_v3  ;;  %2073 = vmatpush3.bf16.msra.mxu0 %v2473_v3  ;;  %v2338_v42 = vld [vmem:[%s2971_s4 + $0x10] sm:$0xff]   ;;  %v2339_v43 = vld [vmem:[%s2971_s4 + $0x18] sm:$0xff]   ;;  %v2340_v44 = vld [vmem:[%s2971_s4 + $0x20] sm:$0xff]  }
  0x10   :  { %2010 = vmatprep.subr.bf16.mxu1 %v2487_v5  ;;  %2074 = vmatprep.subr.bf16.mxu0 %v2487_v5  ;;  %v2341_v45 = vld [vmem:[%s2971_s4 + $0x28] sm:$0xff]   ;;  %v2342_v46 = vld [vmem:[%s2971_s4 + $0x30] sm:$0xff]   ;;  %v2343_v47 = vld [vmem:[%s2971_s4 + $0x38] sm:$0xff]  }
  0x11   :  { %v2344_v48 = vld [vmem:[%s2972_s7] sm:$0xff]   ;;  %v2345_v49 = vld [vmem:[%s2972_s7 + $0x8] sm:$0xff]   ;;  %v2346_v50 = vld [vmem:[%s2972_s7 + $0x10] sm:$0xff]  }
  0x12   :  { %v2347_v51 = vld [vmem:[%s2972_s7 + $0x18] sm:$0xff]   ;;  %v2348_v52 = vld [vmem:[%s2972_s7 + $0x20] sm:$0xff]   ;;  %v2349_v53 = vld [vmem:[%s2972_s7 + $0x28] sm:$0xff]  }
  0x13   :  { %2011 = vmatpush3.bf16.msra.mxu1 %v2487_v5  ;;  %2075 = vmatpush3.bf16.msra.mxu0 %v2487_v5 }
  0x14   :  { %2012 = vmatprep.subr.bf16.mxu1 %v2496_v6  ;;  %2076 = vmatprep.subr.bf16.mxu0 %v2496_v6 }
  0x17   :  { %2013 = vmatpush3.bf16.msra.mxu1 %v2496_v6  ;;  %2077 = vmatpush3.bf16.msra.mxu0 %v2496_v6 }
  0x18   :  { %2014 = vmatprep.subr.bf16.mxu1 %v2508_v8  ;;  %2078 = vmatprep.subr.bf16.mxu0 %v2508_v8 }
  0x1b   :  { %2015 = vmatpush3.bf16.msra.mxu1 %v2508_v8  ;;  %2079 = vmatpush3.bf16.msra.mxu0 %v2508_v8 }
  0x1c   :  { %2016 = vmatprep.subr.bf16.mxu1 %v2517_v9  ;;  %2080 = vmatprep.subr.bf16.mxu0 %v2517_v9 }
  0x1f   :  { %2017 = vmatpush3.bf16.msra.mxu1 %v2517_v9  ;;  %2081 = vmatpush3.bf16.msra.mxu0 %v2517_v9 }
  0x20   :  { %2034 = vmatprep.subr.bf16.mxu1 %v2451_v0  ;;  %2130 = vmatprep.subr.bf16.mxu0 %v2336_v40 }
  0x22   :  { %2019 = vmatmul.mubr.bf16.vlgmr.msra.gmra.mrb[0].mxu1 %v2305_v10  ;;  %2083 = vmatmul.mubr.bf16.vlgmr.msra.gmra.mrb[0].mxu0 %v2315_v11 }
  0x23   :  { %2035 = vmatpush3.bf16.msra.mxu1 %v2451_v0  ;;  %2022 = vmatprep.mubr.bf16.mxu1 %v2306_v12 }
  0x24   :  { %2036 = vmatprep.subr.bf16.mxu1 %v2456_v1  ;;  %2086 = vmatprep.mubr.bf16.mxu0 %v2318_v13 }
  0x25   :  { %2131 = vmatpush3.bf16.msra.mxu0 %v2336_v40 }
  0x26   :  { %2132 = vmatprep.subr.bf16.mxu0 %v2337_v41 }
  0x27   :  { %2037 = vmatpush3.bf16.msra.mxu1 %v2456_v1 }
  0x28   :  { %2038 = vmatprep.subr.bf16.mxu1 %v2466_v2 }
  0x29   :  { %2133 = vmatpush3.bf16.msra.mxu0 %v2337_v41 }
  0x2a   :  { %2023 = vmatmul.mubr.bf16.gmra.mrb[4].mxu1 %v2307_v14  ;;  %2087 = vmatmul.mubr.bf16.gmra.mrb[4].mxu0 %v2319_v15 }
  0x2b   :  { %2039 = vmatpush3.bf16.msra.mxu1 %v2466_v2  ;;  %2026 = vmatprep.mubr.bf16.mxu1 %v2308_v16 }
  0x2c   :  { %2040 = vmatprep.subr.bf16.mxu1 %v2473_v3  ;;  %2090 = vmatprep.mubr.bf16.mxu0 %v2322_v17 }
  0x2d   :  { %2134 = vmatprep.subr.bf16.mxu0 %v2338_v42 }
  0x2e   :  { %2135 = vmatpush3.bf16.msra.mxu0 %v2338_v42 }
  0x2f   :  { %2041 = vmatpush3.bf16.msra.mxu1 %v2473_v3  ;;  %2136 = vmatprep.subr.bf16.mxu0 %v2339_v43 }
  0x30   :  { %2042 = vmatprep.subr.bf16.mxu1 %v2487_v5 }
  0x32   :  { %2027 = vmatmul.mubr.bf16.gmra.mrb[8].mxu1 %v2309_v18  ;;  %2091 = vmatmul.mubr.bf16.gmra.mrb[8].mxu0 %v2323_v19 }
  0x33   :  { %2043 = vmatpush3.bf16.msra.mxu1 %v2487_v5  ;;  %2030 = vmatprep.mubr.bf16.mxu1 %v2310_v20 }
  0x34   :  { %2044 = vmatprep.subr.bf16.mxu1 %v2496_v6  ;;  %2094 = vmatprep.mubr.bf16.mxu0 %v2326_v21 }
  0x35   :  { %2137 = vmatpush3.bf16.msra.mxu0 %v2339_v43 }
  0x36   :  { %2138 = vmatprep.subr.bf16.mxu0 %v2340_v44 }
  0x37   :  { %2045 = vmatpush3.bf16.msra.mxu1 %v2496_v6 }
  0x38   :  { %2046 = vmatprep.subr.bf16.mxu1 %v2508_v8 }
  0x39   :  { %2139 = vmatpush3.bf16.msra.mxu0 %v2340_v44 }
  0x3a   :  { %2031 = vmatmul.mubr.bf16.gmra.mrb[12].mxu1 %v2311_v22  ;;  %2095 = vmatmul.mubr.bf16.gmra.mrb[12].mxu0 %v2327_v23  ;;  %v2731_v22 = vld [vmem:[%s2973_s3] ss:$0 sm:$0xff] }
  0x3b   :  { %2047 = vmatpush3.bf16.msra.mxu1 %v2508_v8  ;;  %2050 = vmatprep.mubr.bf16.mxu1 %v2312_v24 }
  0x3c   :  { %2048 = vmatprep.subr.bf16.mxu1 %v2517_v9  ;;  %2140 = vmatprep.subr.bf16.mxu0 %v2341_v45 }
  0x3d   :  { %2141 = vmatpush3.bf16.msra.mxu0 %v2341_v45 }
  0x3e   :  { %2142 = vmatprep.subr.bf16.mxu0 %v2342_v46 }
  0x3f   :  { %2049 = vmatpush3.bf16.msra.mxu1 %v2517_v9 }
  0x40   :  { %2098 = vmatprep.subr.bf16.mxu1 %v2451_v0 }
  0x41   :  { %2143 = vmatpush3.bf16.msra.mxu0 %v2342_v46 }
  0x42   :  { %2051 = vmatmul.mubr.bf16.vlgmr.msra.gmra.mrb[16].mxu1 %v2313_v25  ;;  %2144 = vmatprep.subr.bf16.mxu0 %v2343_v47 }
  0x43   :  { %2099 = vmatpush3.bf16.msra.mxu1 %v2451_v0  ;;  %2054 = vmatprep.mubr.bf16.mxu1 %v2316_v26 }
  0x44   :  { %2100 = vmatprep.subr.bf16.mxu1 %v2456_v1 }
  0x45   :  { %2145 = vmatpush3.bf16.msra.mxu0 %v2343_v47 }
  0x47   :  { %2101 = vmatpush3.bf16.msra.mxu1 %v2456_v1 }
  0x48   :  { %2102 = vmatprep.subr.bf16.mxu1 %v2466_v2 }
  0x4a   :  { %2055 = vmatmul.mubr.bf16.gmra.mrb[20].mxu1 %v2317_v27 }
  0x4b   :  { %2103 = vmatpush3.bf16.msra.mxu1 %v2466_v2  ;;  %2058 = vmatprep.mubr.bf16.mxu1 %v2320_v28 }
  0x4c   :  { %2104 = vmatprep.subr.bf16.mxu1 %v2473_v3 }
  0x4f   :  { %2105 = vmatpush3.bf16.msra.mxu1 %v2473_v3 }
  0x50   :  { %2106 = vmatprep.subr.bf16.mxu1 %v2487_v5 }
  0x52   :  { %2059 = vmatmul.mubr.bf16.gmra.mrb[24].mxu1 %v2321_v29 }
  0x53   :  { %2107 = vmatpush3.bf16.msra.mxu1 %v2487_v5  ;;  %2062 = vmatprep.mubr.bf16.mxu1 %v2324_v30 }
  0x54   :  { %2108 = vmatprep.subr.bf16.mxu1 %v2496_v6 }
  0x57   :  { %2109 = vmatpush3.bf16.msra.mxu1 %v2496_v6 }
  0x58   :  { %2110 = vmatprep.subr.bf16.mxu1 %v2508_v8 }
  0x5a   :  { %2063 = vmatmul.mubr.bf16.gmra.mrb[28].mxu1 %v2325_v31 }
  0x5b   :  { %2111 = vmatpush3.bf16.msra.mxu1 %v2508_v8  ;;  %2114 = vmatprep.mubr.bf16.mxu1 %v2328_v32 }
  0x5c   :  { %2112 = vmatprep.subr.bf16.mxu1 %v2517_v9 }
  0x5f   :  { %2113 = vmatpush3.bf16.msra.mxu1 %v2517_v9 }
  0x60   :  { %2162 = vmatprep.subr.bf16.mxu1 %v2344_v48 }
  0x62   :  { %2115 = vmatmul.mubr.bf16.vlgmr.msra.gmra.mrb[32].mxu1 %v2329_v33 }
  0x63   :  { %2118 = vmatprep.mubr.bf16.mxu1 %v2330_v34  ;;  %2163 = vmatpush3.bf16.msra.mxu1 %v2344_v48 }
  0x64   :  { %2164 = vmatprep.subr.bf16.mxu1 %v2345_v49 }
  0x67   :  { %2165 = vmatpush3.bf16.msra.mxu1 %v2345_v49 }
  0x68   :  { %2166 = vmatprep.subr.bf16.mxu1 %v2346_v50 }
  0x6a   :  { %2119 = vmatmul.mubr.bf16.gmra.mrb[36].mxu1 %v2331_v35 }
  0x6b   :  { %2122 = vmatprep.mubr.bf16.mxu1 %v2332_v36  ;;  %2167 = vmatpush3.bf16.msra.mxu1 %v2346_v50 }
  0x6c   :  { %2168 = vmatprep.subr.bf16.mxu1 %v2347_v51 }
  0x6f   :  { %2169 = vmatpush3.bf16.msra.mxu1 %v2347_v51 }
  0x70   :  { %2170 = vmatprep.subr.bf16.mxu1 %v2348_v52 }
  0x72   :  { %2123 = vmatmul.mubr.bf16.gmra.mrb[40].mxu1 %v2333_v37 }
  0x73   :  { %2126 = vmatprep.mubr.bf16.mxu1 %v2334_v38  ;;  %2171 = vmatpush3.bf16.msra.mxu1 %v2348_v52 }
  0x74   :  { %2172 = vmatprep.subr.bf16.mxu1 %v2349_v53 }
  0x77   :  { %2173 = vmatpush3.bf16.msra.mxu1 %v2349_v53 }
  0x7a   :  { %2127 = vmatmul.mubr.bf16.gmra.mrb[44].mxu1 %v2335_v39 }
  0xf5   :  { %v2020_v54 = vpop.f32.mrb[0].mxu1  ;;  %v2084_v55 = vpop.f32.mrb[0].mxu0 }
  0xf6   :  { %v215_v56 = vpop.f32.mrb[1].mxu1  ;;  %v587_v57 = vpop.f32.mrb[1].mxu0  ;;  %v224_v23 = vadd.f32 %v2020_v54, %v2731_v22  ;;  %v596_v24 = vadd.f32 %v2084_v55, %v2731_v22 }
  0xf7   :  { %v2021_v58 = vpop.f32.mrb[2].mxu1  ;;  %v2085_v59 = vpop.f32.mrb[2].mxu0  ;;  %v216_v25 = vadd.f32 %v2731_v22, %v215_v56  ;;  %v588_v27 = vadd.f32 %v2731_v22, %v587_v57 }
  0xf8   :  { %v218_v60 = vpop.f32.mrb[3].mxu1  ;;  %v590_v61 = vpop.f32.mrb[3].mxu0  ;;  %v227_v28 = vadd.f32 %v2021_v58, %v2731_v22  ;;  %v599_v31 = vadd.f32 %v2085_v59, %v2731_v22  ;;  %v280_v36 = vmax.f32 %v224_v23, 0.0  ;;  %v652_v39 = vmax.f32 %v596_v24, 0.0 }
  0xf9   :  { %v219_v32 = vadd.f32 %v2731_v22, %v218_v60  ;;  %v591_v35 = vadd.f32 %v2731_v22, %v590_v61  ;;  %v278_v41 = vmax.f32 %v216_v25, 0.0  ;;  %v650_v44 = vmax.f32 %v588_v27, 0.0 }
  0xfa   :  { %v281_v45 = vmax.f32 %v227_v28, 0.0  ;;  %v653_v48 = vmax.f32 %v599_v31, 0.0 }
  0xfb   :  { %v279_v49 = vmax.f32 %v219_v32, 0.0  ;;  %v651_v52 = vmax.f32 %v591_v35, 0.0 }
  0xfd   :  { %v2024_v62 = vpop.f32.mrb[4].mxu1  ;;  %v2088_v63 = vpop.f32.mrb[4].mxu0 }
  0xfe   :  { %v231_v0 = vpop.f32.mrb[5].mxu1  ;;  %v603_v1 = vpop.f32.mrb[5].mxu0  ;;  %v240_v53 = vadd.f32 %v2024_v62, %v2731_v22  ;;  %v612_v56 = vadd.f32 %v2088_v63, %v2731_v22 }
  0xff   :  { %v2025_v2 = vpop.f32.mrb[6].mxu1  ;;  %v2690_v3 = vpop.f32.mrb[6].mxu0  ;;  %v232_v57 = vadd.f32 %v2731_v22, %v231_v0  ;;  %v604_v61 = vadd.f32 %v2731_v22, %v603_v1 }
 0x100   :  { %v2692_v4 = vpop.f32.mrb[7].mxu1  ;;  %v2694_v5 = vpop.f32.mrb[7].mxu0  ;;  %v243_v23 = vadd.f32 %v2025_v2, %v2731_v22  ;;  %v284_v2 = vmax.f32 %v240_v53, 0.0  ;;  %v656_v31 = vmax.f32 %v612_v56, 0.0 }
 0x101   :  { %v235_v63 = vadd.f32 %v2731_v22, %v2692_v4  ;;  %v607_v1 = vadd.f32 %v2731_v22, %v2694_v5  ;;  %v654_v35 = vmax.f32 %v604_v61, 0.0 }
 0x102   :  { %v285_v4 = vmax.f32 %v243_v23, 0.0 }
 0x105   :  { %v2696_v6 = vpop.f32.mrb[8].mxu1  ;;  %v2698_v7 = vpop.f32.mrb[8].mxu0 }
 0x106   :  { %v2700_v8 = vpop.f32.mrb[9].mxu1  ;;  %v2702_v9 = vpop.f32.mrb[9].mxu0  ;;  %v256_v5 = vadd.f32 %v2696_v6, %v2731_v22 }
 0x107   :  { %v2704_v10 = vpop.f32.mrb[10].mxu1  ;;  %v2706_v11 = vpop.f32.mrb[10].mxu0 }
 0x108   :  { %v2708_v12 = vpop.f32.mrb[11].mxu1  ;;  %v2710_v13 = vpop.f32.mrb[11].mxu0 }
 0x10d   :  { %v2712_v14 = vpop.f32.mrb[12].mxu1  ;;  %v2714_v15 = vpop.f32.mrb[12].mxu0 }
 0x10e   :  { %v2716_v16 = vpop.f32.mrb[13].mxu1  ;;  %v2718_v17 = vpop.f32.mrb[13].mxu0 }
 0x10f   :  { %v2720_v18 = vpop.f32.mrb[14].mxu1  ;;  %v2722_v19 = vpop.f32.mrb[14].mxu0 }
 0x110   :  { %v2724_v20 = vpop.f32.mrb[15].mxu1  ;;  %v2726_v21 = vpop.f32.mrb[15].mxu0 }
 0x115   :  { %v2052_v26 = vpop.f32.mrb[16].mxu1 }
 0x116   :  { %v402_v29 = vadd.f32 %v2052_v26, %v2731_v22  ;;  %v393_v30 = vpop.f32.mrb[17].mxu1  ;;  %v615_v26 = vadd.f32 %v2690_v3, %v2731_v22 }
 0x117   :  { %v394_v33 = vadd.f32 %v2731_v22, %v393_v30  ;;  %v2053_v34 = vpop.f32.mrb[18].mxu1 }
 0x118   :  { %v458_v37 = vmax.f32 %v402_v29, 0.0  ;;  %v405_v38 = vadd.f32 %v2053_v34, %v2731_v22  ;;  %v396_v40 = vpop.f32.mrb[19].mxu1 }
 0x119   :  { %v456_v42 = vmax.f32 %v394_v33, 0.0  ;;  %v397_v43 = vadd.f32 %v2731_v22, %v396_v40  ;;  %v282_v33 = vmax.f32 %v232_v57, 0.0 }
 0x11a   :  { %v474_v46 = vadd.f32 %v458_v37, %v280_v36  ;;  %v459_v47 = vmax.f32 %v405_v38, 0.0  ;;  %v657_v38 = vmax.f32 %v615_v26, 0.0 }
 0x11b   :  { %v472_v50 = vadd.f32 %v456_v42, %v278_v41  ;;  %v457_v51 = vmax.f32 %v397_v43, 0.0  ;;  %v655_v42 = vmax.f32 %v607_v1, 0.0 }
 0x11c   :  { %v475_v54 = vadd.f32 %v459_v47, %v281_v45  ;;  %v2746_v55 = vadd.f32 %v652_v39, %v474_v46  ;;  %v283_v39 = vmax.f32 %v235_v63, 0.0  ;;  %v628_v45 = vadd.f32 %v2698_v7, %v2731_v22 }
 0x11d   :  { %v473_v58 = vadd.f32 %v457_v51, %v279_v49  ;;  %v2750_v59 = vadd.f32 %v650_v44, %v472_v50  ;;  %v2056_v60 = vpop.f32.mrb[20].mxu1  ;;  %v248_v46 = vadd.f32 %v2731_v22, %v2700_v8  ;;  %v620_v50 = vadd.f32 %v2731_v22, %v2702_v9 }
 0x11e   :  { %v2754_v24 = vadd.f32 %v653_v48, %v475_v54  ;;  %v418_v25 = vadd.f32 %v2056_v60, %v2731_v22  ;;  %v409_v62 = vpop.f32.mrb[21].mxu1  ;;  %v259_v51 = vadd.f32 %v2704_v10, %v2731_v22  ;;  %v631_v7 = vadd.f32 %v2706_v11, %v2731_v22 }
 0x11f   :  { %v2761_v0 = vadd.f32 %v651_v52, %v473_v58  ;;  %v410_v27 = vadd.f32 %v2731_v22, %v409_v62  ;;  %v2057_v28 = vpop.f32.mrb[22].mxu1  ;;  %v251_v8 = vadd.f32 %v2731_v22, %v2708_v12  ;;  %v623_v9 = vadd.f32 %v2731_v22, %v2710_v13 }
 0x120   :  { %v462_v29 = vmax.f32 %v418_v25, 0.0  ;;  %v421_v30 = vadd.f32 %v2057_v28, %v2731_v22  ;;  %v412_v32 = vpop.f32.mrb[23].mxu1  ;;  %v288_v10 = vmax.f32 %v256_v5, 0.0  ;;  %v660_v61 = vmax.f32 %v628_v45, 0.0 }
 0x121   :  { %v460_v34 = vmax.f32 %v410_v27, 0.0  ;;  %v413_v3 = vadd.f32 %v2731_v22, %v412_v32  ;;  %v286_v25 = vmax.f32 %v248_v46, 0.0  ;;  %v658_v26 = vmax.f32 %v620_v50, 0.0 }
 0x122   :  { %v478_v36 = vadd.f32 %v462_v29, %v284_v2  ;;  %v463_v37 = vmax.f32 %v421_v30, 0.0  ;;  %v289_v12 = vmax.f32 %v259_v51, 0.0  ;;  %v661_v28 = vmax.f32 %v631_v7, 0.0 }
 0x123   :  { %v476_v40 = vadd.f32 %v460_v34, %v282_v33  ;;  %v461_v41 = vmax.f32 %v413_v3, 0.0  ;;  %v287_v1 = vmax.f32 %v251_v8, 0.0  ;;  %v659_v30 = vmax.f32 %v623_v9, 0.0 }
 0x124   :  { %v479_v43 = vadd.f32 %v463_v37, %v285_v4  ;;  %v2770_v44 = vadd.f32 %v656_v31, %v478_v36  ;;  %v272_v13 = vadd.f32 %v2712_v14, %v2731_v22  ;;  %v644_v33 = vadd.f32 %v2714_v15, %v2731_v22 }
 0x125   :  { %v477_v47 = vadd.f32 %v461_v41, %v283_v39  ;;  %v2776_v48 = vadd.f32 %v654_v35, %v476_v40  ;;  %v2060_v49 = vpop.f32.mrb[24].mxu1  ;;  %v264_v34 = vadd.f32 %v2731_v22, %v2716_v16  ;;  %v636_v36 = vadd.f32 %v2731_v22, %v2718_v17 }
 0x126   :  { %v2782_v6 = vadd.f32 %v657_v38, %v479_v43  ;;  %v434_v52 = vadd.f32 %v2060_v49, %v2731_v22  ;;  %v425_v53 = vpop.f32.mrb[25].mxu1  ;;  %v275_v37 = vadd.f32 %v2720_v18, %v2731_v22  ;;  %v647_v15 = vadd.f32 %v2722_v19, %v2731_v22 }
 0x127   :  { %v2789_v54 = vadd.f32 %v655_v42, %v477_v47  ;;  %v426_v56 = vadd.f32 %v2731_v22, %v425_v53  ;;  %v2061_v57 = vpop.f32.mrb[26].mxu1  ;;  %v267_v16 = vadd.f32 %v2731_v22, %v2724_v20  ;;  %v639_v17 = vadd.f32 %v2731_v22, %v2726_v21 }
 0x128   :  { %v466_v58 = vmax.f32 %v434_v52, 0.0  ;;  %v437_v60 = vadd.f32 %v2061_v57, %v2731_v22  ;;  %v428_v23 = vpop.f32.mrb[27].mxu1  ;;  %v292_v18 = vmax.f32 %v272_v13, 0.0  ;;  %v664_v45 = vmax.f32 %v644_v33, 0.0 }
 0x129   :  { %v464_v62 = vmax.f32 %v426_v56, 0.0  ;;  %v429_v11 = vadd.f32 %v2731_v22, %v428_v23  ;;  %v290_v47 = vmax.f32 %v264_v34, 0.0  ;;  %v662_v50 = vmax.f32 %v636_v36, 0.0 }
 0x12a   :  { %v482_v63 = vadd.f32 %v466_v58, %v288_v10  ;;  %v467_v27 = vmax.f32 %v437_v60, 0.0  ;;  %v293_v20 = vmax.f32 %v275_v37, 0.0  ;;  %v665_v53 = vmax.f32 %v647_v15, 0.0 }
 0x12b   :  { %v480_v2 = vadd.f32 %v464_v62, %v286_v25  ;;  %v465_v29 = vmax.f32 %v429_v11, 0.0  ;;  %v291_v7 = vmax.f32 %v267_v16, 0.0  ;;  %v663_v57 = vmax.f32 %v639_v17, 0.0 }
 0x12c   :  { %v483_v31 = vadd.f32 %v467_v27, %v289_v12  ;;  %v2798_v32 = vadd.f32 %v660_v61, %v482_v63 }
 0x12d   :  { %v481_v3 = vadd.f32 %v465_v29, %v287_v1  ;;  %v2804_v35 = vadd.f32 %v658_v26, %v480_v2  ;;  %v2064_v4 = vpop.f32.mrb[28].mxu1 }
 0x12e   :  { %v2810_v14 = vadd.f32 %v661_v28, %v483_v31  ;;  %v450_v38 = vadd.f32 %v2064_v4, %v2731_v22  ;;  %v441_v39 = vpop.f32.mrb[29].mxu1 }
 0x12f   :  { %v2817_v40 = vadd.f32 %v659_v30, %v481_v3  ;;  %v442_v41 = vadd.f32 %v2731_v22, %v441_v39  ;;  %v2065_v42 = vpop.f32.mrb[30].mxu1 }
 0x130   :  { %v470_v5 = vmax.f32 %v450_v38, 0.0  ;;  %v453_v43 = vadd.f32 %v2065_v42, %v2731_v22  ;;  %v444_v46 = vpop.f32.mrb[31].mxu1 }
 0x131   :  { %v468_v49 = vmax.f32 %v442_v41, 0.0  ;;  %v445_v19 = vadd.f32 %v2731_v22, %v444_v46 }
 0x132   :  { %v486_v51 = vadd.f32 %v470_v5, %v292_v18  ;;  %v471_v52 = vmax.f32 %v453_v43, 0.0 }
 0x133   :  { %v484_v8 = vadd.f32 %v468_v49, %v290_v47  ;;  %v469_v56 = vmax.f32 %v445_v19, 0.0 }
 0x134   :  { %v487_v21 = vadd.f32 %v471_v52, %v293_v20  ;;  %v2824_v9 = vadd.f32 %v664_v45, %v486_v51 }
 0x135   :  { %v485_v10 = vadd.f32 %v469_v56, %v291_v7  ;;  %v2826_v58 = vadd.f32 %v662_v50, %v484_v8  ;;  %v2116_v60 = vpop.f32.mrb[32].mxu1 }
 0x136   :  { %v2828_v61 = vadd.f32 %v665_v53, %v487_v21  ;;  %v790_v23 = vadd.f32 %v2116_v60, %v2731_v22  ;;  %v781_v25 = vpop.f32.mrb[33].mxu1 }
 0x137   :  { %v2831_v62 = vadd.f32 %v663_v57, %v485_v10  ;;  %v782_v11 = vadd.f32 %v2731_v22, %v781_v25  ;;  %v2117_v26 = vpop.f32.mrb[34].mxu1 }
 0x138   :  { %v846_v12 = vmax.f32 %v790_v23, 0.0  ;;  %v793_v63 = vadd.f32 %v2117_v26, %v2731_v22  ;;  %v784_v27 = vpop.f32.mrb[35].mxu1 }
 0x139   :  { %v844_v28 = vmax.f32 %v782_v11, 0.0  ;;  %v785_v1 = vadd.f32 %v2731_v22, %v784_v27 }
 0x13a   :  { %v862_v2 = vadd.f32 %v846_v12, %v2746_v55  ;;  %v847_v29 = vmax.f32 %v793_v63, 0.0 }
 0x13b   :  { %v860_v30 = vadd.f32 %v844_v28, %v2750_v59  ;;  %v845_v13 = vmax.f32 %v785_v1, 0.0 }
 0x13c   :  { %v863_v31 = vadd.f32 %v847_v29, %v2754_v24 }
 0x13d   :  { %v861_v33 = vadd.f32 %v845_v13, %v2761_v0  ;;  %v2120_v34 = vpop.f32.mrb[36].mxu1  ;;  %v2370_v13 = vld [vmem:[%s2976_s9 + $0x10] sm:$0xff]  }
 0x13e   :  { %v877_v3 = vpack.c.bf16 %v863_v31, %v862_v2  ;;  %v806_v4 = vadd.f32 %v2120_v34, %v2731_v22  ;;  %v797_v36 = vpop.f32.mrb[37].mxu1  ;;  %v2371_v31 = vld [vmem:[%s2976_s9 + $0x18] sm:$0xff]   ;;  %v2373_v34 = vld [vmem:[%s2976_s9 + $0x28] sm:$0xff]  }
 0x13f   :  { %v798_v37 = vadd.f32 %v2731_v22, %v797_v36  ;;  %v2121_v38 = vpop.f32.mrb[38].mxu1  ;;  %v876_v39 = vpack.c.bf16 %v861_v33, %v860_v30  ;;  %v2372_v33 = vld [vmem:[%s2976_s9 + $0x20] sm:$0xff]  }
 0x140   :  { %v850_v15 = vmax.f32 %v806_v4, 0.0  ;;  %v809_v55 = vadd.f32 %v2121_v38, %v2731_v22  ;;  %v800_v16 = vpop.f32.mrb[39].mxu1  ;;  %v900_v36 = vld [vmem:[%s2977_s5] sm:$0x1] }
 0x141   :  { %v848_v41 = vmax.f32 %v798_v37, 0.0  ;;  %v801_v59 = vadd.f32 %v2731_v22, %v800_v16  ;;  %2146 = vmatprep.mubr.bf16.mxu0 %v876_v39  ;;  %v901_v37 = vmul.f32 4.0, %v900_v36 }
 0x142   :  { %v866_v24 = vadd.f32 %v850_v15, %v2770_v44  ;;  %v851_v0 = vmax.f32 %v809_v55, 0.0  ;;  %2147 = vmatmul.mubr.bf16.vlgmr.msra.gmra.mrb[16].mxu0 %v877_v3  ;;  %v903_v3 = vlaneseq }
 0x143   :  { %v864_v42 = vadd.f32 %v848_v41, %v2776_v48  ;;  %v849_v17 = vmax.f32 %v801_v59, 0.0 }
 0x144   :  { %v867_v18 = vadd.f32 %v851_v0, %v2782_v6  ;;  %v904_v4 = vshrl.u32 %v903_v3, 7 }
 0x145   :  { %v865_v5 = vadd.f32 %v849_v17, %v2789_v54  ;;  %v2124_v43 = vpop.f32.mrb[40].mxu1 }
 0x146   :  { %v822_v45 = vadd.f32 %v2124_v43, %v2731_v22  ;;  %v813_v46 = vpop.f32.mrb[41].mxu1  ;;  %v879_v47 = vpack.c.bf16 %v867_v18, %v866_v24  ;;  %v905_v38 = vsub.s32 0, %v904_v4 }
 0x147   :  { %v814_v49 = vadd.f32 %v2731_v22, %v813_v46  ;;  %v2125_v19 = vpop.f32.mrb[42].mxu1  ;;  %v878_v50 = vpack.c.bf16 %v865_v5, %v864_v42  ;;  %v2353_v5 = vld [vmem:[%s2974_s6 + $0x8] sm:$0xff]  }
 0x148   :  { %v854_v20 = vmax.f32 %v822_v45, 0.0  ;;  %v825_v44 = vadd.f32 %v2125_v19, %v2731_v22  ;;  %v816_v51 = vpop.f32.mrb[43].mxu1  ;;  %v906_v39 = vrot.slane %v901_v37, %v905_v38 }
 0x149   :  { %v852_v52 = vmax.f32 %v814_v49, 0.0  ;;  %v817_v48 = vadd.f32 %v2731_v22, %v816_v51  ;;  %2150 = vmatprep.mubr.bf16.mxu0 %v878_v50  ;;  %v2354_v50 = vld [vmem:[%s2974_s6 + $0x10] sm:$0xff]  }
 0x14a   :  { %v870_v6 = vadd.f32 %v854_v20, %v2798_v32  ;;  %v855_v54 = vmax.f32 %v825_v44, 0.0  ;;  %2151 = vmatmul.mubr.bf16.gmra.mrb[20].mxu0 %v879_v47 }
 0x14b   :  { %v868_v53 = vadd.f32 %v852_v52, %v2804_v35  ;;  %v853_v7 = vmax.f32 %v817_v48, 0.0  ;;  %v2355_v48 = vld [vmem:[%s2974_s6 + $0x18] sm:$0xff]  }
 0x14c   :  { %v871_v8 = vadd.f32 %v855_v54, %v2810_v14 }
 0x14d   :  { %v869_v56 = vadd.f32 %v853_v7, %v2817_v40  ;;  %v2128_v57 = vpop.f32.mrb[44].mxu1 }
 0x14e   :  { %v838_v21 = vadd.f32 %v2128_v57, %v2731_v22  ;;  %v829_v10 = vpop.f32.mrb[45].mxu1  ;;  %v881_v60 = vpack.c.bf16 %v871_v8, %v870_v6  ;;  %v2356_v57 = vld [vmem:[%s2974_s6 + $0x20] sm:$0xff]  }
 0x14f   :  { %v830_v23 = vadd.f32 %v2731_v22, %v829_v10  ;;  %v2129_v25 = vpop.f32.mrb[46].mxu1  ;;  %v880_v11 = vpack.c.bf16 %v869_v56, %v868_v53 }
 0x150   :  { %v858_v26 = vmax.f32 %v838_v21, 0.0  ;;  %v841_v32 = vadd.f32 %v2129_v25, %v2731_v22  ;;  %v832_v12 = vpop.f32.mrb[47].mxu1  ;;  %v2357_v25 = vld [vmem:[%s2974_s6 + $0x28] sm:$0xff]  }
 0x151   :  { %v856_v63 = vmax.f32 %v830_v23, 0.0  ;;  %v833_v35 = vadd.f32 %v2731_v22, %v832_v12  ;;  %2154 = vmatprep.mubr.bf16.mxu0 %v880_v11  ;;  %v2350_v22 = vld [vmem:[%s2972_s7 + $0x30] sm:$0xff]  }
 0x152   :  { %v874_v14 = vadd.f32 %v858_v26, %v2824_v9  ;;  %v859_v40 = vmax.f32 %v841_v32, 0.0  ;;  %2155 = vmatmul.mubr.bf16.gmra.mrb[24].mxu0 %v881_v60  ;;  %2174 = vmatprep.subr.bf16.mxu1 %v2350_v22  ;;  %v2351_v9 = vld [vmem:[%s2972_s7 + $0x38] sm:$0xff]  }
 0x153   :  { %v872_v27 = vadd.f32 %v856_v63, %v2826_v58  ;;  %v857_v28 = vmax.f32 %v833_v35, 0.0  ;;  %2175 = vmatpush3.bf16.msra.mxu1 %v2350_v22  ;;  %v2352_v58 = vld [vmem:[%s2974_s6] sm:$0xff]   ;;  %v2362_v22 = vld [vmem:[%s2975_s1 + $0x10] sm:$0xff]  }
 0x154   :  { %v875_v1 = vadd.f32 %v859_v40, %v2828_v61  ;;  %2176 = vmatprep.subr.bf16.mxu1 %v2351_v9  ;;  %v2368_v61 = vld [vmem:[%s2976_s9] sm:$0xff]  }
 0x155   :  { %v873_v2 = vadd.f32 %v857_v28, %v2831_v62  ;;  %v2369_v62 = vld [vmem:[%s2976_s9 + $0x8] sm:$0xff]   ;;  %2226 = vmatprep.subr.bf16.mxu0 %v2368_v61 }
 0x156   :  { %v883_v29 = vpack.c.bf16 %v875_v1, %v874_v14  ;;  %2227 = vmatpush3.bf16.msra.mxu0 %v2368_v61  ;;  %v2358_v14 = vld [vmem:[%s2974_s6 + $0x30] sm:$0xff]   ;;  %v2365_v61 = vld [vmem:[%s2975_s1 + $0x28] sm:$0xff]  }
 0x157   :  { %v882_v30 = vpack.c.bf16 %v873_v2, %v872_v27  ;;  %2177 = vmatpush3.bf16.msra.mxu1 %v2351_v9  ;;  %2228 = vmatprep.subr.bf16.mxu0 %v2369_v62  ;;  %v2360_v2 = vld [vmem:[%s2975_s1] sm:$0xff]   ;;  %v2363_v9 = vld [vmem:[%s2975_s1 + $0x18] sm:$0xff]  }
 0x158   :  { %2194 = vmatprep.subr.bf16.mxu1 %v2352_v58 }
 0x159   :  { %2158 = vmatprep.mubr.bf16.mxu0 %v882_v30  ;;  %v2361_v30 = vld [vmem:[%s2975_s1 + $0x8] sm:$0xff]  }
 0x15a   :  { %2159 = vmatmul.mubr.bf16.gmra.mrb[28].mxu0 %v883_v29  ;;  %v2359_v29 = vld [vmem:[%s2974_s6 + $0x38] sm:$0xff]  }
 0x15b   :  { %2229 = vmatpush3.bf16.msra.mxu0 %v2369_v62  ;;  %v2366_v62 = vld [vmem:[%s2975_s1 + $0x30] sm:$0xff]  }
 0x15c   :  { %2230 = vmatprep.subr.bf16.mxu0 %v2370_v13 }
 0x15f   :  { %2231 = vmatpush3.bf16.msra.mxu0 %v2370_v13  ;;  %v2367_v13 = vld [vmem:[%s2975_s1 + $0x38] sm:$0xff]  }
 0x160   :  { %2232 = vmatprep.subr.bf16.mxu0 %v2371_v31 }
 0x163   :  { %2233 = vmatpush3.bf16.msra.mxu0 %v2371_v31  ;;  %v2374_v31 = vld [vmem:[%s2976_s9 + $0x30] sm:$0xff]  }
 0x164   :  { %2234 = vmatprep.subr.bf16.mxu0 %v2372_v33 }
 0x167   :  { %2235 = vmatpush3.bf16.msra.mxu0 %v2372_v33  ;;  %v2375_v33 = vld [vmem:[%s2976_s9 + $0x38] sm:$0xff]  }
 0x168   :  { %2236 = vmatprep.subr.bf16.mxu0 %v2373_v34 }
 0x16b   :  { %2237 = vmatpush3.bf16.msra.mxu0 %v2373_v34  ;;  %v1855_v34 = vld [vmem:[%s2978_s8] ss:$0 sm:$0xff] }
 0x16c   :  { %2238 = vmatprep.subr.bf16.mxu0 %v2374_v31 }
 0x16f   :  { %2239 = vmatpush3.bf16.msra.mxu0 %v2374_v31 }
 0x170   :  { %2240 = vmatprep.subr.bf16.mxu0 %v2375_v33 }
 0x173   :  { %2241 = vmatpush3.bf16.msra.mxu0 %v2375_v33 }
 0x215   :  { %v2148_v15 = vpop.f32.mrb[16].mxu0 }
 0x216   :  { %v990_v55 = vpop.f32.mrb[17].mxu0  ;;  %v999_v41 = vadd.f32 %v2148_v15, %v906_v39 }
 0x217   :  { %v2149_v16 = vpop.f32.mrb[18].mxu0  ;;  %v991_v0 = vadd.f32 %v990_v55, %v906_v39 }
 0x218   :  { %v1002_v59 = vadd.f32 %v2149_v16, %v906_v39  ;;  %v993_v24 = vpop.f32.mrb[19].mxu0 }
 0x219   :  { %v994_v42 = vadd.f32 %v993_v24, %v906_v39 }
 0x21a   :  { %v1086_v17 = vpack.c.bf16 %v1002_v59, %v999_v41 }
 0x21b   :  { %v1085_v18 = vpack.c.bf16 %v994_v42, %v991_v0 }
 0x21d   :  { %v2152_v43 = vpop.f32.mrb[20].mxu0  ;;  %2178 = vmatprep.mubr.bf16.mxu1 %v1085_v18 }
 0x21e   :  { %v1006_v45 = vpop.f32.mrb[21].mxu0  ;;  %2179 = vmatmul.mubr.bf16.vlgmr.msra.gmra.mrb[48].mxu1 %v1086_v17  ;;  %v1015_v47 = vadd.f32 %v2152_v43, %v906_v39 }
 0x21f   :  { %v2153_v46 = vpop.f32.mrb[22].mxu0  ;;  %2195 = vmatpush3.bf16.msra.mxu1 %v2352_v58  ;;  %v1007_v20 = vadd.f32 %v1006_v45, %v906_v39  ;;  %v2364_v58 = vld [vmem:[%s2975_s1 + $0x20] sm:$0xff]  }
 0x220   :  { %v1018_v49 = vadd.f32 %v2153_v46, %v906_v39  ;;  %v1009_v19 = vpop.f32.mrb[23].mxu0  ;;  %2196 = vmatprep.subr.bf16.mxu1 %v2353_v5 }
 0x221   :  { %v1010_v44 = vadd.f32 %v1009_v19, %v906_v39 }
 0x222   :  { %v1088_v51 = vpack.c.bf16 %v1018_v49, %v1015_v47 }
 0x223   :  { %v1087_v52 = vpack.c.bf16 %v1010_v44, %v1007_v20  ;;  %2197 = vmatpush3.bf16.msra.mxu1 %v2353_v5 }
 0x224   :  { %2198 = vmatprep.subr.bf16.mxu1 %v2354_v50 }
 0x225   :  { %v2156_v6 = vpop.f32.mrb[24].mxu0  ;;  %2182 = vmatprep.mubr.bf16.mxu1 %v1087_v52 }
 0x226   :  { %v1022_v54 = vpop.f32.mrb[25].mxu0  ;;  %2183 = vmatmul.mubr.bf16.gmra.mrb[52].mxu1 %v1088_v51  ;;  %v1031_v7 = vadd.f32 %v2156_v6, %v906_v39 }
 0x227   :  { %v2157_v53 = vpop.f32.mrb[26].mxu0  ;;  %2199 = vmatpush3.bf16.msra.mxu1 %v2354_v50  ;;  %v1023_v21 = vadd.f32 %v1022_v54, %v906_v39 }
 0x228   :  { %v1034_v8 = vadd.f32 %v2157_v53, %v906_v39  ;;  %v1025_v56 = vpop.f32.mrb[27].mxu0  ;;  %2200 = vmatprep.subr.bf16.mxu1 %v2355_v48 }
 0x229   :  { %v1026_v10 = vadd.f32 %v1025_v56, %v906_v39 }
 0x22a   :  { %v1090_v60 = vpack.c.bf16 %v1034_v8, %v1031_v7 }
 0x22b   :  { %v1089_v23 = vpack.c.bf16 %v1026_v10, %v1023_v21  ;;  %2201 = vmatpush3.bf16.msra.mxu1 %v2355_v48 }
 0x22c   :  { %2202 = vmatprep.subr.bf16.mxu1 %v2356_v57 }
 0x22d   :  { %v2160_v11 = vpop.f32.mrb[28].mxu0  ;;  %2186 = vmatprep.mubr.bf16.mxu1 %v1089_v23 }
 0x22e   :  { %v1038_v26 = vpop.f32.mrb[29].mxu0  ;;  %2187 = vmatmul.mubr.bf16.gmra.mrb[56].mxu1 %v1090_v60  ;;  %v1047_v12 = vadd.f32 %v2160_v11, %v906_v39 }
 0x22f   :  { %v2161_v32 = vpop.f32.mrb[30].mxu0  ;;  %2203 = vmatpush3.bf16.msra.mxu1 %v2356_v57  ;;  %v1039_v40 = vadd.f32 %v1038_v26, %v906_v39 }
 0x230   :  { %v1050_v63 = vadd.f32 %v2161_v32, %v906_v39  ;;  %v1041_v35 = vpop.f32.mrb[31].mxu0  ;;  %2204 = vmatprep.subr.bf16.mxu1 %v2357_v25 }
 0x231   :  { %v1042_v27 = vadd.f32 %v1041_v35, %v906_v39 }
 0x232   :  { %v1092_v28 = vpack.c.bf16 %v1050_v63, %v1047_v12 }
 0x233   :  { %v1091_v1 = vpack.c.bf16 %v1042_v27, %v1039_v40  ;;  %2205 = vmatpush3.bf16.msra.mxu1 %v2357_v25 }
 0x234   :  { %2206 = vmatprep.subr.bf16.mxu1 %v2358_v14 }
 0x235   :  { %2190 = vmatprep.mubr.bf16.mxu1 %v1091_v1 }
 0x236   :  { %2191 = vmatmul.mubr.bf16.gmra.mrb[60].mxu1 %v1092_v28 }
 0x237   :  { %2207 = vmatpush3.bf16.msra.mxu1 %v2358_v14  ;;  %2210 = vmatprep.mubr.bf16.mxu1 %v2360_v2 }
 0x238   :  { %2208 = vmatprep.subr.bf16.mxu1 %v2359_v29 }
 0x23b   :  { %2209 = vmatpush3.bf16.msra.mxu1 %v2359_v29 }
 0x23e   :  { %2211 = vmatmul.mubr.bf16.vlgmr.msra.gmra.mrb[48].mxu1 %v2361_v30 }
 0x23f   :  { %2214 = vmatprep.mubr.bf16.mxu1 %v2362_v22 }
 0x246   :  { %2215 = vmatmul.mubr.bf16.gmra.mrb[52].mxu1 %v2363_v9  ;;  %v2376_v9 = vmov 0.0  }
 0x247   :  { %2218 = vmatprep.mubr.bf16.mxu1 %v2364_v58  ;;  %2258 = vmatprep.subr.bf16.mxu0 %v2376_v9  ;;  %v1856_v58 = vld [vmem:[%s2979_s10] ss:$0 sm:$0xff] }
 0x24e   :  { %2219 = vmatmul.mubr.bf16.gmra.mrb[56].mxu1 %v2365_v61 }
 0x24f   :  { %2222 = vmatprep.mubr.bf16.mxu1 %v2366_v62 }
 0x256   :  { %2223 = vmatmul.mubr.bf16.gmra.mrb[60].mxu1 %v2367_v13 }
 0x311   :  { %v2212_v3 = vpop.f32.mrb[48].mxu1 }
 0x312   :  { %v1456_v4 = vadd.f32 %v2212_v3, %v1855_v34  ;;  %v1384_v36 = vpop.f32.mrb[49].mxu1 }
 0x313   :  { %v1454_v37 = vadd.f32 %v1855_v34, %v1384_v36  ;;  %v2213_v38 = vpop.f32.mrb[50].mxu1 }
 0x314   :  { %v1457_v39 = vadd.f32 %v2213_v38, %v1855_v34  ;;  %v1387_v15 = vpop.f32.mrb[51].mxu1  ;;  %v1472_v16 = vmax.f32 %v1456_v4, 0.0 }
 0x315   :  { %v1455_v55 = vadd.f32 %v1855_v34, %v1387_v15  ;;  %v1470_v59 = vmax.f32 %v1454_v37, 0.0 }
 0x316   :  { %v1473_v41 = vmax.f32 %v1457_v39, 0.0 }
 0x317   :  { %v1471_v24 = vmax.f32 %v1455_v55, 0.0 }
 0x318   :  { %v1487_v0 = vpack.c.bf16 %v1473_v41, %v1472_v16 }
 0x319   :  { %v1486_v42 = vpack.c.bf16 %v1471_v24, %v1470_v59  ;;  %v2216_v17 = vpop.f32.mrb[52].mxu1 }
 0x31a   :  { %v1460_v18 = vadd.f32 %v2216_v17, %v1855_v34  ;;  %v1400_v5 = vpop.f32.mrb[53].mxu1 }
 0x31b   :  { %v1458_v43 = vadd.f32 %v1855_v34, %v1400_v5  ;;  %v2217_v45 = vpop.f32.mrb[54].mxu1  ;;  %2242 = vmatprep.mubr.bf16.mxu0 %v1486_v42 }
 0x31c   :  { %v1461_v46 = vadd.f32 %v2217_v45, %v1855_v34  ;;  %v1403_v47 = vpop.f32.mrb[55].mxu1  ;;  %2243 = vmatmul.mubr.bf16.vlgmr.msra.gmra.mrb[32].mxu0 %v1487_v0  ;;  %v1476_v19 = vmax.f32 %v1460_v18, 0.0 }
 0x31d   :  { %v1459_v49 = vadd.f32 %v1855_v34, %v1403_v47  ;;  %v1474_v20 = vmax.f32 %v1458_v43, 0.0 }
 0x31e   :  { %v1477_v50 = vmax.f32 %v1461_v46, 0.0 }
 0x31f   :  { %v1475_v44 = vmax.f32 %v1459_v49, 0.0 }
 0x320   :  { %v1489_v51 = vpack.c.bf16 %v1477_v50, %v1476_v19 }
 0x321   :  { %v1488_v52 = vpack.c.bf16 %v1475_v44, %v1474_v20  ;;  %v2220_v48 = vpop.f32.mrb[56].mxu1 }
 0x322   :  { %v1464_v6 = vadd.f32 %v2220_v48, %v1855_v34  ;;  %v1416_v54 = vpop.f32.mrb[57].mxu1 }
 0x323   :  { %v1462_v53 = vadd.f32 %v1855_v34, %v1416_v54  ;;  %v2221_v7 = vpop.f32.mrb[58].mxu1  ;;  %2246 = vmatprep.mubr.bf16.mxu0 %v1488_v52 }
 0x324   :  { %v1465_v8 = vadd.f32 %v2221_v7, %v1855_v34  ;;  %v1419_v56 = vpop.f32.mrb[59].mxu1  ;;  %2247 = vmatmul.mubr.bf16.gmra.mrb[36].mxu0 %v1489_v51  ;;  %v1480_v21 = vmax.f32 %v1464_v6, 0.0 }
 0x325   :  { %v1463_v57 = vadd.f32 %v1855_v34, %v1419_v56  ;;  %v1478_v60 = vmax.f32 %v1462_v53, 0.0 }
 0x326   :  { %v1481_v10 = vmax.f32 %v1465_v8, 0.0 }
 0x327   :  { %v1479_v23 = vmax.f32 %v1463_v57, 0.0 }
 0x328   :  { %v1491_v25 = vpack.c.bf16 %v1481_v10, %v1480_v21 }
 0x329   :  { %v1490_v11 = vpack.c.bf16 %v1479_v23, %v1478_v60  ;;  %v2224_v26 = vpop.f32.mrb[60].mxu1 }
 0x32a   :  { %v1468_v32 = vadd.f32 %v2224_v26, %v1855_v34  ;;  %v1432_v12 = vpop.f32.mrb[61].mxu1 }
 0x32b   :  { %v1466_v63 = vadd.f32 %v1855_v34, %v1432_v12  ;;  %v2225_v35 = vpop.f32.mrb[62].mxu1  ;;  %2250 = vmatprep.mubr.bf16.mxu0 %v1490_v11 }
 0x32c   :  { %v1469_v14 = vadd.f32 %v2225_v35, %v1855_v34  ;;  %v1435_v40 = vpop.f32.mrb[63].mxu1  ;;  %2251 = vmatmul.mubr.bf16.gmra.mrb[40].mxu0 %v1491_v25  ;;  %v1484_v28 = vmax.f32 %v1468_v32, 0.0 }
 0x32d   :  { %v1467_v27 = vadd.f32 %v1855_v34, %v1435_v40  ;;  %v1482_v2 = vmax.f32 %v1466_v63, 0.0 }
 0x32e   :  { %v1485_v1 = vmax.f32 %v1469_v14, 0.0 }
 0x32f   :  { %v1483_v29 = vmax.f32 %v1467_v27, 0.0 }
 0x330   :  { %v1493_v30 = vpack.c.bf16 %v1485_v1, %v1484_v28  ;;  %v1678_v28 = vld [vmem:[%s2980_s11] sm:$0x1]  ;;  %v1688_v1 = vstv %s2981_s12 }
 0x331   :  { %v1492_v22 = vpack.c.bf16 %v1483_v29, %v1482_v2 }
 0x333   :  { %2254 = vmatprep.mubr.bf16.mxu0 %v1492_v22 }
 0x334   :  { %2255 = vmatmul.mubr.bf16.gmra.mrb[44].mxu0 %v1493_v30 }
 0x335   :  { %2274 = vmatprep.mubr.msk.bf16.mxu0 %vm2377_vm0, %v2376_v9 }
 0x3ef   :  { %v2244_v61 = vpop.f32.mrb[32].mxu0 }
 0x3f0   :  { %v1608_v62 = vadd.f32 %v2244_v61, %v1856_v58  ;;  %v1599_v13 = vpop.f32.mrb[33].mxu0 }
 0x3f1   :  { %v1600_v31 = vadd.f32 %v1856_v58, %v1599_v13  ;;  %v2245_v33 = vpop.f32.mrb[34].mxu0 }
 0x3f2   :  { %v1611_v34 = vadd.f32 %v2245_v33, %v1856_v58  ;;  %v1602_v3 = vpop.f32.mrb[35].mxu0  ;;  %v1664_v36 = vmax.f32 %v1608_v62, 0.0 }
 0x3f3   :  { %v1603_v4 = vadd.f32 %v1856_v58, %v1602_v3  ;;  %v1662_v38 = vmax.f32 %v1600_v31, 0.0 }
 0x3f4   :  { %v1665_v37 = vmax.f32 %v1611_v34, 0.0 }
 0x3f5   :  { %v1663_v39 = vmax.f32 %v1603_v4, 0.0 }
 0x3f6   :  { %v1680_v15 = vpack.c.bf16 %v1665_v37, %v1664_v36 }
 0x3f7   :  { %v1679_v55 = vpack.c.bf16 %v1663_v39, %v1662_v38  ;;  %v2248_v16 = vpop.f32.mrb[36].mxu0 }
 0x3f8   :  { %v1624_v41 = vadd.f32 %v2248_v16, %v1856_v58  ;;  %v1615_v59 = vpop.f32.mrb[37].mxu0 }
 0x3f9   :  { %v1616_v24 = vadd.f32 %v1856_v58, %v1615_v59  ;;  %v2249_v0 = vpop.f32.mrb[38].mxu0  ;;  %2259 = vmatpush3.bf16.xpose.msra.mxu0 %v1679_v55 }
 0x3fa   :  { %v1627_v42 = vadd.f32 %v2249_v0, %v1856_v58  ;;  %v1618_v17 = vpop.f32.mrb[39].mxu0  ;;  %2260 = vmatprep.subr.bf16.mxu0 %v2376_v9  ;;  %v1668_v5 = vmax.f32 %v1624_v41, 0.0 }
 0x3fb   :  { %v1619_v18 = vadd.f32 %v1856_v58, %v1618_v17  ;;  %v1666_v45 = vmax.f32 %v1616_v24, 0.0 }
 0x3fc   :  { %v1669_v43 = vmax.f32 %v1627_v42, 0.0 }
 0x3fd   :  { %v1667_v46 = vmax.f32 %v1619_v18, 0.0 }
 0x3fe   :  { %v1682_v47 = vpack.c.bf16 %v1669_v43, %v1668_v5 }
 0x3ff   :  { %v1681_v49 = vpack.c.bf16 %v1667_v46, %v1666_v45  ;;  %v2252_v19 = vpop.f32.mrb[40].mxu0 }
 0x400   :  { %v1640_v50 = vadd.f32 %v2252_v19, %v1856_v58  ;;  %v1631_v20 = vpop.f32.mrb[41].mxu0 }
 0x401   :  { %v1632_v44 = vadd.f32 %v1856_v58, %v1631_v20  ;;  %v2253_v51 = vpop.f32.mrb[42].mxu0  ;;  %2261 = vmatpush3.bf16.xpose.msra.mxu0 %v1680_v15 }
 0x402   :  { %v1643_v52 = vadd.f32 %v2253_v51, %v1856_v58  ;;  %v1634_v48 = vpop.f32.mrb[43].mxu0  ;;  %2262 = vmatprep.subr.bf16.mxu0 %v2376_v9  ;;  %v1672_v54 = vmax.f32 %v1640_v50, 0.0 }
 0x403   :  { %v1635_v6 = vadd.f32 %v1856_v58, %v1634_v48  ;;  %v1670_v7 = vmax.f32 %v1632_v44, 0.0 }
 0x404   :  { %v1673_v53 = vmax.f32 %v1643_v52, 0.0 }
 0x405   :  { %v1671_v8 = vmax.f32 %v1635_v6, 0.0 }
 0x406   :  { %v1684_v56 = vpack.c.bf16 %v1673_v53, %v1672_v54 }
 0x407   :  { %v1683_v57 = vpack.c.bf16 %v1671_v8, %v1670_v7  ;;  %v2256_v21 = vpop.f32.mrb[44].mxu0 }
 0x408   :  { %v1656_v10 = vadd.f32 %v2256_v21, %v1856_v58  ;;  %v1647_v60 = vpop.f32.mrb[45].mxu0 }
 0x409   :  { %v1648_v23 = vadd.f32 %v1856_v58, %v1647_v60  ;;  %v2257_v25 = vpop.f32.mrb[46].mxu0  ;;  %2263 = vmatpush3.bf16.xpose.msra.mxu0 %v1681_v49 }
 0x40a   :  { %v1659_v11 = vadd.f32 %v2257_v25, %v1856_v58  ;;  %v1650_v26 = vpop.f32.mrb[47].mxu0  ;;  %2264 = vmatprep.subr.bf16.mxu0 %v2376_v9  ;;  %v1676_v12 = vmax.f32 %v1656_v10, 0.0 }
 0x40b   :  { %v1651_v32 = vadd.f32 %v1856_v58, %v1650_v26  ;;  %v1674_v35 = vmax.f32 %v1648_v23, 0.0 }
 0x40c   :  { %v1677_v63 = vmax.f32 %v1659_v11, 0.0 }
 0x40d   :  { %v1675_v14 = vmax.f32 %v1651_v32, 0.0 }
 0x40e   :  { %v1686_v40 = vpack.c.bf16 %v1677_v63, %v1676_v12 }
 0x40f   :  { %v1685_v27 = vpack.c.bf16 %v1675_v14, %v1674_v35 }
 0x411   :  { %2265 = vmatpush3.bf16.xpose.msra.mxu0 %v1682_v47 }
 0x412   :  { %2266 = vmatprep.subr.bf16.mxu0 %v2376_v9 }
 0x419   :  { %2267 = vmatpush3.bf16.xpose.msra.mxu0 %v1683_v57 }
 0x41a   :  { %2268 = vmatprep.subr.bf16.mxu0 %v2376_v9 }
 0x421   :  { %2269 = vmatpush3.bf16.xpose.msra.mxu0 %v1684_v56 }
 0x422   :  { %2270 = vmatprep.subr.bf16.mxu0 %v2376_v9 }
 0x429   :  { %2271 = vmatpush3.bf16.xpose.msra.mxu0 %v1685_v27 }
 0x42a   :  { %2272 = vmatprep.subr.bf16.mxu0 %v2376_v9 }
 0x431   :  { %2273 = vmatpush3.bf16.xpose.msra.mxu0 %v1686_v40 }
 0x438   :  { %2275 = vmatmul.mubr.bf16.vlgmr.msra.gmra.mrb[48].mxu0 %v1678_v28 }
 0x50b   :  { %v1723_v2 = vpop.f32.mrb[48].mxu0 }
 0x50c   :  { %v1724_v29 = vadd.f32 %v1723_v2, %v1688_v1  ;;  %v2276_v30 = vpop.f32.mrb[49].mxu0 }
 0x50d   :  { %v1726_v22 = vpop.f32.mrb[50].mxu0 }
 0x50e   :  { %1729 = vst [vmem:[%s2982_s13] sm:$0x1] %v1724_v29  ;;  %v2277_v58 = vpop.f32.mrb[51].mxu0 }

</bundles_post_ra>
